<compile_context>
chip_gen: v5e
topology: v5e:2x2
jax: 0.10.0
libtpu: 0.0.40
codegen_flags: <defaults>
</compile_context>

<pallas_src>
import functools

import jax
import jax.numpy as jnp
from jax.experimental import pallas as pl
from jax.experimental.pallas import tpu as pltpu

BN_EPS = 1e-5


def _bn_relu(z, g, be, inv_b):
    """Training-mode BatchNorm1d + ReLU, two-pass (mean-centered) variance."""
    mean = jnp.sum(z, axis=0, keepdims=True) * inv_b
    zc = z - mean
    var = jnp.sum(zc * zc, axis=0, keepdims=True) * inv_b
    scale = g * jax.lax.rsqrt(var + BN_EPS)
    return jnp.maximum(zc * scale + be, 0.0)


def cond_emb_kernel(y_ref, w0_ref, wstack_ref, vecs_ref, out_ref):
    # vecs_ref row layout: [g0, be0, g1, be1, g2, be2, g3, be3, b4]  (9, D_PAD)
    # Biases b0..b3 and the +1e-8 input offset are omitted: they cancel
    # exactly under training-mode BatchNorm (per-column mean subtraction).
    inv_b = 1.0 / y_ref.shape[0]

    # Layer 0.
    z = jnp.dot(y_ref[...], w0_ref[...], preferred_element_type=jnp.float32)
    h = _bn_relu(z, vecs_ref[0:1, :], vecs_ref[1:2, :], inv_b)

    # Hidden layers 1..3 (static unroll).
    for li in range(1, 4):
        z = jnp.dot(h, wstack_ref[li - 1], preferred_element_type=jnp.float32)
        h = _bn_relu(z, vecs_ref[2 * li:2 * li + 1, :],
                     vecs_ref[2 * li + 1:2 * li + 2, :], inv_b)

    # Final Linear (bias b4 survives; no BN / ReLU).
    out_ref[...] = (jnp.dot(h, wstack_ref[3], preferred_element_type=jnp.float32)
                    + vecs_ref[8:9, :]).astype(out_ref.dtype)


def init_params(key, dim_y, dim_out):
    """Deterministic PyTorch-style uniform init: U(-1/sqrt(fan_in), +1/sqrt(fan_in))."""
    dims_in = [dim_y] + [dim_out] * 4
    params = []
    for li, fan_in in enumerate(dims_in):
        key, kw, kb = jax.random.split(key, 3)
        bound = 1.0 / jnp.sqrt(fan_in)
        w = jax.random.uniform(kw, (fan_in, dim_out), jnp.float32, -bound, bound)
        b = jax.random.uniform(kb, (1, dim_out), jnp.float32, -bound, bound)
        params.append(w)
        params.append(b)
        if li < 4:  # BatchNorm affine params (gamma=1, beta=0 at init)
            params.append(jnp.ones((1, dim_out), jnp.float32))
            params.append(jnp.zeros((1, dim_out), jnp.float32))
    return params


def pack_params(params, dim_out):
    """One-time packing of the 18 raw tensors into 3 lane-dense kernel operands.

    dim_out is zero-padded to a multiple of 128 (>=128).  Gamma/beta/biases are
    padded with 0, so padded feature columns are exactly 0 through every
    BN+ReLU and are sliced off in the wrapper.
    """
    d_pad = max(128, ((dim_out + 127) // 128) * 128)
    p = list(params)

    def pad_cols(m):
        return jnp.pad(m, ((0, 0), (0, d_pad - m.shape[1])))

    def pad_full(m):
        return jnp.pad(m, ((0, d_pad - m.shape[0]), (0, d_pad - m.shape[1])))

    w0 = pad_cols(p[0])                                   # (dim_y, d_pad)

    ws = [pad_full(p[4 * li]) for li in range(1, 4)]       # hidden weights
    ws.append(pad_full(p[16]))                             # final weight
    w_stack = jnp.stack(ws, axis=0)                        # (4, d_pad, d_pad)

    rows = []
    for li in range(4):                                    # BN gamma/beta only
        _, _, g, be = p[4 * li: 4 * li + 4]
        rows += [pad_cols(g), pad_cols(be)]
    rows.append(pad_cols(p[17]))                           # b4
    vecs = jnp.concatenate(rows, axis=0)                   # (9, d_pad)
    return w0, w_stack, vecs


@functools.partial(jax.jit, static_argnames=("dim_y", "dim_out"))
def conditional_embedding(y, w0, w_stack, vecs, *, dim_y, dim_out):
    y2d = y.reshape(-1, dim_y).astype(jnp.float32)
    B = y2d.shape[0]
    d_pad = w_stack.shape[-1]

    # Scheduling hint for XLA around the custom call.
    cost = pl.CostEstimate(
        flops=2 * B * (dim_y + 4 * dim_out) * dim_out,
        transcendentals=4 * dim_out,
        bytes_accessed=4 * (y2d.size + w0.size + w_stack.size + vecs.size + B * d_pad),
    )

    # Explicit VMEM budget: inputs + output + ~5 live (B, d_pad) f32 temps,
    # 2x headroom, raised to >=32 MiB (v5e default scoped limit is 16 MiB),
    # capped at 64 MiB (v7x physical VMEM).
    needed = 4 * (y2d.size + w0.size + w_stack.size + vecs.size + 6 * B * d_pad)
    vmem_limit = int(min(max(2 * needed, 32 * 1024 * 1024), 64 * 1024 * 1024))

    vmem = pl.BlockSpec(memory_space=pltpu.MemorySpace.VMEM)
    out_padded = pl.pallas_call(
        cond_emb_kernel,
        out_shape=jax.ShapeDtypeStruct((B, d_pad), jnp.float32),
        in_specs=[vmem, vmem, vmem, vmem],
        out_specs=vmem,
        cost_estimate=cost,
        compiler_params=pltpu.CompilerParams(vmem_limit_bytes=vmem_limit),
    )(y2d, w0, w_stack, vecs)
    return out_padded[:, :dim_out]


def reference(y, params, dim_y):
    """Plain-JAX reference matching the PyTorch module (training-mode BN)."""
    h = y.reshape(-1, dim_y).astype(jnp.float32) + 1e-8
    p = list(params)
    for li in range(4):
        w, b, g, be = p[li * 4: li * 4 + 4]
        z = h @ w + b
        mean = jnp.mean(z, axis=0, keepdims=True)
        var = jnp.mean((z - mean) ** 2, axis=0, keepdims=True)
        h = jnp.maximum(g * (z - mean) / jnp.sqrt(var + BN_EPS) + be, 0.0)
    w, b = p[16], p[17]
    return h @ w + b


if __name__ == "__main__":
    dim_y, dim_out = 16, 32
    key = jax.random.PRNGKey(0)
    k_y, k_p = jax.random.split(key)

    # y with a leading structure that gets flattened by view(-1, dim_y):
    y = jax.random.normal(k_y, (2, 4, dim_y), jnp.float32)   # -> (8, 16) inside
    params = init_params(k_p, dim_y, dim_out)
    w0, w_stack, vecs = pack_params(params, dim_out)          # packed once, reused

    out = conditional_embedding(y, w0, w_stack, vecs, dim_y=dim_y, dim_out=dim_out)
    out = jax.block_until_ready(out)

    ref = reference(y, params, dim_y)
    assert out.shape == (8, dim_out)
    assert jnp.allclose(out, ref, atol=1e-4, rtol=1e-4), "mismatch vs reference"

    print("KERNEL_OK")
</pallas_src>

<mosaic_0001>
module attributes {stable_mosaic.version = 11 : i64} {
  func.func @cond_emb_kernel(%arg0: memref<8x16xf32, #tpu.memory_space<vmem>>, %arg1: memref<16x128xf32, #tpu.memory_space<vmem>>, %arg2: memref<4x128x128xf32, #tpu.memory_space<vmem>>, %arg3: memref<9x128xf32, #tpu.memory_space<vmem>>, %arg4: memref<8x128xf32, #tpu.memory_space<vmem>>) attributes {dimension_semantics = [], scalar_prefetch = 0 : i64, scratch_operands = 0 : i64, tpu.core_type = #tpu.core_type<tc>} {
    %c0 = arith.constant 0 : index
    %c0_0 = arith.constant 0 : index
    %0 = vector.load %arg0[%c0, %c0_0] : memref<8x16xf32, #tpu.memory_space<vmem>>, vector<8x16xf32>
    %c0_1 = arith.constant 0 : index
    %c0_2 = arith.constant 0 : index
    %1 = vector.load %arg1[%c0_1, %c0_2] : memref<16x128xf32, #tpu.memory_space<vmem>>, vector<16x128xf32>
    %cst = arith.constant dense<0.000000e+00> : vector<8x128xf32>
    %2 = tpu.matmul %0, %1, %cst {dimension_numbers = #tpu.dot_dimension_numbers<[1], [0], [0], [1], [0, 0, 1, 1], [], []>} : vector<8x16xf32>, vector<16x128xf32>, vector<8x128xf32> -> vector<8x128xf32>
    %c0_3 = arith.constant 0 : index
    %c0_4 = arith.constant 0 : index
    %3 = vector.load %arg3[%c0_3, %c0_4] : memref<9x128xf32, #tpu.memory_space<vmem>>, vector<1x128xf32>
    %c1 = arith.constant 1 : index
    %c0_5 = arith.constant 0 : index
    %4 = vector.load %arg3[%c1, %c0_5] : memref<9x128xf32, #tpu.memory_space<vmem>>, vector<1x128xf32>
    %cst_6 = arith.constant dense<0.000000e+00> : vector<128xf32>
    %5 = vector.multi_reduction <add>, %2, %cst_6 [0] : vector<8x128xf32> to vector<128xf32>
    %6 = vector.shape_cast %5 : vector<128xf32> to vector<1x128xf32>
    %cst_7 = arith.constant 1.250000e-01 : f32
    %7 = vector.broadcast %cst_7 : f32 to vector<1x128xf32>
    %8 = arith.mulf %6, %7 : vector<1x128xf32>
    %9 = vector.broadcast %8 : vector<1x128xf32> to vector<8x128xf32>
    %10 = arith.subf %2, %9 : vector<8x128xf32>
    %11 = arith.mulf %10, %10 : vector<8x128xf32>
    %cst_8 = arith.constant dense<0.000000e+00> : vector<128xf32>
    %12 = vector.multi_reduction <add>, %11, %cst_8 [0] : vector<8x128xf32> to vector<128xf32>
    %13 = vector.shape_cast %12 : vector<128xf32> to vector<1x128xf32>
    %cst_9 = arith.constant 1.250000e-01 : f32
    %14 = vector.broadcast %cst_9 : f32 to vector<1x128xf32>
    %15 = arith.mulf %13, %14 : vector<1x128xf32>
    %cst_10 = arith.constant 9.99999974E-6 : f32
    %16 = vector.broadcast %cst_10 : f32 to vector<1x128xf32>
    %17 = arith.addf %15, %16 : vector<1x128xf32>
    %18 = math.rsqrt %17 : vector<1x128xf32>
    %19 = arith.mulf %3, %18 : vector<1x128xf32>
    %20 = vector.broadcast %19 : vector<1x128xf32> to vector<8x128xf32>
    %21 = arith.mulf %10, %20 : vector<8x128xf32>
    %22 = vector.broadcast %4 : vector<1x128xf32> to vector<8x128xf32>
    %23 = arith.addf %21, %22 : vector<8x128xf32>
    %cst_11 = arith.constant 0.000000e+00 : f32
    %24 = vector.broadcast %cst_11 : f32 to vector<8x128xf32>
    %25 = arith.maximumf %23, %24 : vector<8x128xf32>
    %c0_12 = arith.constant 0 : index
    %c0_13 = arith.constant 0 : index
    %c0_14 = arith.constant 0 : index
    %26 = vector.load %arg2[%c0_12, %c0_13, %c0_14] : memref<4x128x128xf32, #tpu.memory_space<vmem>>, vector<1x128x128xf32>
    %27 = vector.shape_cast %26 : vector<1x128x128xf32> to vector<128x128xf32>
    %cst_15 = arith.constant dense<0.000000e+00> : vector<8x128xf32>
    %28 = tpu.matmul %25, %27, %cst_15 {dimension_numbers = #tpu.dot_dimension_numbers<[1], [0], [0], [1], [0, 0, 1, 1], [], []>} : vector<8x128xf32>, vector<128x128xf32>, vector<8x128xf32> -> vector<8x128xf32>
    %c2 = arith.constant 2 : index
    %c0_16 = arith.constant 0 : index
    %29 = vector.load %arg3[%c2, %c0_16] : memref<9x128xf32, #tpu.memory_space<vmem>>, vector<1x128xf32>
    %c3 = arith.constant 3 : index
    %c0_17 = arith.constant 0 : index
    %30 = vector.load %arg3[%c3, %c0_17] : memref<9x128xf32, #tpu.memory_space<vmem>>, vector<1x128xf32>
    %cst_18 = arith.constant dense<0.000000e+00> : vector<128xf32>
    %31 = vector.multi_reduction <add>, %28, %cst_18 [0] : vector<8x128xf32> to vector<128xf32>
    %32 = vector.shape_cast %31 : vector<128xf32> to vector<1x128xf32>
    %cst_19 = arith.constant 1.250000e-01 : f32
    %33 = vector.broadcast %cst_19 : f32 to vector<1x128xf32>
    %34 = arith.mulf %32, %33 : vector<1x128xf32>
    %35 = vector.broadcast %34 : vector<1x128xf32> to vector<8x128xf32>
    %36 = arith.subf %28, %35 : vector<8x128xf32>
    %37 = arith.mulf %36, %36 : vector<8x128xf32>
    %cst_20 = arith.constant dense<0.000000e+00> : vector<128xf32>
    %38 = vector.multi_reduction <add>, %37, %cst_20 [0] : vector<8x128xf32> to vector<128xf32>
    %39 = vector.shape_cast %38 : vector<128xf32> to vector<1x128xf32>
    %cst_21 = arith.constant 1.250000e-01 : f32
    %40 = vector.broadcast %cst_21 : f32 to vector<1x128xf32>
    %41 = arith.mulf %39, %40 : vector<1x128xf32>
    %cst_22 = arith.constant 9.99999974E-6 : f32
    %42 = vector.broadcast %cst_22 : f32 to vector<1x128xf32>
    %43 = arith.addf %41, %42 : vector<1x128xf32>
    %44 = math.rsqrt %43 : vector<1x128xf32>
    %45 = arith.mulf %29, %44 : vector<1x128xf32>
    %46 = vector.broadcast %45 : vector<1x128xf32> to vector<8x128xf32>
    %47 = arith.mulf %36, %46 : vector<8x128xf32>
    %48 = vector.broadcast %30 : vector<1x128xf32> to vector<8x128xf32>
    %49 = arith.addf %47, %48 : vector<8x128xf32>
    %cst_23 = arith.constant 0.000000e+00 : f32
    %50 = vector.broadcast %cst_23 : f32 to vector<8x128xf32>
    %51 = arith.maximumf %49, %50 : vector<8x128xf32>
    %c1_24 = arith.constant 1 : index
    %c0_25 = arith.constant 0 : index
    %c0_26 = arith.constant 0 : index
    %52 = vector.load %arg2[%c1_24, %c0_25, %c0_26] : memref<4x128x128xf32, #tpu.memory_space<vmem>>, vector<1x128x128xf32>
    %53 = vector.shape_cast %52 : vector<1x128x128xf32> to vector<128x128xf32>
    %cst_27 = arith.constant dense<0.000000e+00> : vector<8x128xf32>
    %54 = tpu.matmul %51, %53, %cst_27 {dimension_numbers = #tpu.dot_dimension_numbers<[1], [0], [0], [1], [0, 0, 1, 1], [], []>} : vector<8x128xf32>, vector<128x128xf32>, vector<8x128xf32> -> vector<8x128xf32>
    %c4 = arith.constant 4 : index
    %c0_28 = arith.constant 0 : index
    %55 = vector.load %arg3[%c4, %c0_28] : memref<9x128xf32, #tpu.memory_space<vmem>>, vector<1x128xf32>
    %c5 = arith.constant 5 : index
    %c0_29 = arith.constant 0 : index
    %56 = vector.load %arg3[%c5, %c0_29] : memref<9x128xf32, #tpu.memory_space<vmem>>, vector<1x128xf32>
    %cst_30 = arith.constant dense<0.000000e+00> : vector<128xf32>
    %57 = vector.multi_reduction <add>, %54, %cst_30 [0] : vector<8x128xf32> to vector<128xf32>
    %58 = vector.shape_cast %57 : vector<128xf32> to vector<1x128xf32>
    %cst_31 = arith.constant 1.250000e-01 : f32
    %59 = vector.broadcast %cst_31 : f32 to vector<1x128xf32>
    %60 = arith.mulf %58, %59 : vector<1x128xf32>
    %61 = vector.broadcast %60 : vector<1x128xf32> to vector<8x128xf32>
    %62 = arith.subf %54, %61 : vector<8x128xf32>
    %63 = arith.mulf %62, %62 : vector<8x128xf32>
    %cst_32 = arith.constant dense<0.000000e+00> : vector<128xf32>
    %64 = vector.multi_reduction <add>, %63, %cst_32 [0] : vector<8x128xf32> to vector<128xf32>
    %65 = vector.shape_cast %64 : vector<128xf32> to vector<1x128xf32>
    %cst_33 = arith.constant 1.250000e-01 : f32
    %66 = vector.broadcast %cst_33 : f32 to vector<1x128xf32>
    %67 = arith.mulf %65, %66 : vector<1x128xf32>
    %cst_34 = arith.constant 9.99999974E-6 : f32
    %68 = vector.broadcast %cst_34 : f32 to vector<1x128xf32>
    %69 = arith.addf %67, %68 : vector<1x128xf32>
    %70 = math.rsqrt %69 : vector<1x128xf32>
    %71 = arith.mulf %55, %70 : vector<1x128xf32>
    %72 = vector.broadcast %71 : vector<1x128xf32> to vector<8x128xf32>
    %73 = arith.mulf %62, %72 : vector<8x128xf32>
    %74 = vector.broadcast %56 : vector<1x128xf32> to vector<8x128xf32>
    %75 = arith.addf %73, %74 : vector<8x128xf32>
    %cst_35 = arith.constant 0.000000e+00 : f32
    %76 = vector.broadcast %cst_35 : f32 to vector<8x128xf32>
    %77 = arith.maximumf %75, %76 : vector<8x128xf32>
    %c2_36 = arith.constant 2 : index
    %c0_37 = arith.constant 0 : index
    %c0_38 = arith.constant 0 : index
    %78 = vector.load %arg2[%c2_36, %c0_37, %c0_38] : memref<4x128x128xf32, #tpu.memory_space<vmem>>, vector<1x128x128xf32>
    %79 = vector.shape_cast %78 : vector<1x128x128xf32> to vector<128x128xf32>
    %cst_39 = arith.constant dense<0.000000e+00> : vector<8x128xf32>
    %80 = tpu.matmul %77, %79, %cst_39 {dimension_numbers = #tpu.dot_dimension_numbers<[1], [0], [0], [1], [0, 0, 1, 1], [], []>} : vector<8x128xf32>, vector<128x128xf32>, vector<8x128xf32> -> vector<8x128xf32>
    %c6 = arith.constant 6 : index
    %c0_40 = arith.constant 0 : index
    %81 = vector.load %arg3[%c6, %c0_40] : memref<9x128xf32, #tpu.memory_space<vmem>>, vector<1x128xf32>
    %c7 = arith.constant 7 : index
    %c0_41 = arith.constant 0 : index
    %82 = vector.load %arg3[%c7, %c0_41] : memref<9x128xf32, #tpu.memory_space<vmem>>, vector<1x128xf32>
    %cst_42 = arith.constant dense<0.000000e+00> : vector<128xf32>
    %83 = vector.multi_reduction <add>, %80, %cst_42 [0] : vector<8x128xf32> to vector<128xf32>
    %84 = vector.shape_cast %83 : vector<128xf32> to vector<1x128xf32>
    %cst_43 = arith.constant 1.250000e-01 : f32
    %85 = vector.broadcast %cst_43 : f32 to vector<1x128xf32>
    %86 = arith.mulf %84, %85 : vector<1x128xf32>
    %87 = vector.broadcast %86 : vector<1x128xf32> to vector<8x128xf32>
    %88 = arith.subf %80, %87 : vector<8x128xf32>
    %89 = arith.mulf %88, %88 : vector<8x128xf32>
    %cst_44 = arith.constant dense<0.000000e+00> : vector<128xf32>
    %90 = vector.multi_reduction <add>, %89, %cst_44 [0] : vector<8x128xf32> to vector<128xf32>
    %91 = vector.shape_cast %90 : vector<128xf32> to vector<1x128xf32>
    %cst_45 = arith.constant 1.250000e-01 : f32
    %92 = vector.broadcast %cst_45 : f32 to vector<1x128xf32>
    %93 = arith.mulf %91, %92 : vector<1x128xf32>
    %cst_46 = arith.constant 9.99999974E-6 : f32
    %94 = vector.broadcast %cst_46 : f32 to vector<1x128xf32>
    %95 = arith.addf %93, %94 : vector<1x128xf32>
    %96 = math.rsqrt %95 : vector<1x128xf32>
    %97 = arith.mulf %81, %96 : vector<1x128xf32>
    %98 = vector.broadcast %97 : vector<1x128xf32> to vector<8x128xf32>
    %99 = arith.mulf %88, %98 : vector<8x128xf32>
    %100 = vector.broadcast %82 : vector<1x128xf32> to vector<8x128xf32>
    %101 = arith.addf %99, %100 : vector<8x128xf32>
    %cst_47 = arith.constant 0.000000e+00 : f32
    %102 = vector.broadcast %cst_47 : f32 to vector<8x128xf32>
    %103 = arith.maximumf %101, %102 : vector<8x128xf32>
    %c3_48 = arith.constant 3 : index
    %c0_49 = arith.constant 0 : index
    %c0_50 = arith.constant 0 : index
    %104 = vector.load %arg2[%c3_48, %c0_49, %c0_50] : memref<4x128x128xf32, #tpu.memory_space<vmem>>, vector<1x128x128xf32>
    %105 = vector.shape_cast %104 : vector<1x128x128xf32> to vector<128x128xf32>
    %cst_51 = arith.constant dense<0.000000e+00> : vector<8x128xf32>
    %106 = tpu.matmul %103, %105, %cst_51 {dimension_numbers = #tpu.dot_dimension_numbers<[1], [0], [0], [1], [0, 0, 1, 1], [], []>} : vector<8x128xf32>, vector<128x128xf32>, vector<8x128xf32> -> vector<8x128xf32>
    %c8 = arith.constant 8 : index
    %c0_52 = arith.constant 0 : index
    %107 = vector.load %arg3[%c8, %c0_52] : memref<9x128xf32, #tpu.memory_space<vmem>>, vector<1x128xf32>
    %108 = vector.broadcast %107 : vector<1x128xf32> to vector<8x128xf32>
    %109 = arith.addf %106, %108 : vector<8x128xf32>
    %c0_53 = arith.constant 0 : index
    %c0_54 = arith.constant 0 : index
    %110 = vector.load %arg4[%c0_53, %c0_54] : memref<8x128xf32, #tpu.memory_space<vmem>>, vector<8x128xf32>
    tpu.vector_store %arg4[%c0_53, %c0_54], %109 {strides = array<i32>} : memref<8x128xf32, #tpu.memory_space<vmem>>, vector<8x128xf32>,
    return
  }
}

</mosaic_0001>

<bundles_post_ra>
// kernel: conditional_embedding.1
= control target key start
LH: loop header
LB: loop body
LE: loop exit
PB: predicated region body
PF: predicated region fallthrough
CT: control target
= control target key end

     0   :  { %9 = vsyncpa [#allocation3], 0  ;;  %s611_s0 = inlined_call_operand.hbm [shape: f32[8,16], index: 0, kind: input, shape index: {}]   ;;  %s612_s1 = inlined_call_operand.hbm [shape: f32[16,128], index: 1, kind: input, shape index: {}]   ;;  %s613_s2 = inlined_call_operand.hbm [shape: f32[4,128,128], index: 2, kind: input, shape index: {}]   ;;  %s614_s3 = inlined_call_operand.hbm [shape: f32[9,128], index: 3, kind: input, shape index: {}]   ;;  %s615_s4 = inlined_call_operand.hbm [shape: f32[8,128], index: 4, kind: output, shape index: {}]  }
   0x1   :  { %10 = vsyncpa [#allocation6], 0 }
   0x2   :  { %11 = vsyncpa [#allocation9], 0  ;;  %s28_s17 = sshll.u32 %s612_s1, 4  ;;  %s29_s17 = int_to_ptr.hbm [resolvable:$true] %s28_s17 }
   0x3   :  { %12 = vsyncpa [#allocation4], 0  ;;  %s564_s18 = smov [#allocation5]   ;;  %s18_s22 = sshll.u32 %s611_s0, 4  ;;  %s19_s22 = int_to_ptr.hbm [resolvable:$true] %s18_s22 }
   0x4   :  { %s30_s19 = sshll.u32 %s564_s18, 4  ;;  %s565_s23 = smov 128   ;;  %s31_s19 = int_to_ptr.vmem [resolvable:$true] %s30_s19 }
   0x5   :  { %s566_s24 = smov 8   ;;  %s567_s25 = smov [#allocation2]  }
   0x6   :  { %36 = dma.hbm_to_vmem [thread:$0]  %s29_s17, 256, %s31_s19, [#allocation6], %s565_s23, %s565_s23, %s566_s24  }
   0x7   :  { %s20_s26 = sshll.u32 %s567_s25, 4  ;;  %s41_s29 = sshll.u32 %s613_s2, 4  ;;  %s21_s26 = int_to_ptr.vmem [resolvable:$true] %s20_s26  ;;  %s42_s29 = int_to_ptr.hbm [resolvable:$true] %s41_s29 }
   0x8   :  { %23 = dma.hbm_to_vmem [thread:$0]  %s19_s22, 128, %s21_s26, [#allocation3]  }
   0x9   :  { %s54_s5 = sshll.u32 %s614_s3, 4  ;;  %s568_s6 = smov [#allocation7]   ;;  %s55_s5 = int_to_ptr.hbm [resolvable:$true] %s54_s5 }
   0xa   :  { %s43_s7 = sshll.u32 %s568_s6, 4  ;;  %s569_s0 = smov [#allocation8]   ;;  %s44_s7 = int_to_ptr.vmem [resolvable:$true] %s43_s7 }
   0xb   :  { %49 = dma.hbm_to_vmem [thread:$0]  %s42_s29, 8192, %s44_s7, [#allocation6], %s565_s23, %s565_s23, %s566_s24  }
   0xc   :  { %s56_s8 = sshll.u32 %s569_s0, 4  ;;  %s57_s8 = int_to_ptr.vmem [resolvable:$true] %s56_s8 }
   0xd   :  { %62 = dma.hbm_to_vmem [thread:$0]  %s55_s5, 256, %s57_s8, [#allocation9], %s565_s23, %s565_s23, %s566_s24  }
   0xe   :  { %556 = dma.done.wait [#allocation3], 128  }
   0xf   :  { %557 = vsyncadd [#allocation3], 4294967168 }
  0x10   :  { %558 = dma.done.wait [#allocation6], 8448  }
  0x11   :  { %559 = vsyncadd [#allocation6], 4294958848 }
  0x12   :  { %560 = dma.done.wait [#allocation9], 256  }
  0x13   :  { %561 = vsyncadd [#allocation9], 4294967040  ;;  %v81_v0 = vld [vmem:[#allocation5 + $0x8] sm:$0xff]  ;;  %v80_v1 = vld [vmem:[#allocation5] sm:$0xff]  ;;  %vm82_vm0 = vcmask 130048   ;;  %s570_s2 = smov [#allocation10]  }
  0x14   :  { %v79_v2 = vld [vmem:[#allocation2] sm:$0xff]  ;;  %100 = vmatpush.msra.mxu0 %v81_v0  ;;  %v156_v3 = vld [vmem:[#allocation7 + $0x78] sm:$0xff]  ;;  %v155_v6 = vld [vmem:[#allocation7 + $0x70] sm:$0xff]  ;;  %s401_s3 = sshll.u32 %s570_s2, 4  ;;  %s403_s11 = sshll.u32 %s615_s4, 4  ;;  %s402_s3 = int_to_ptr.vmem [resolvable:$true] %s401_s3  ;;  %s404_s11 = int_to_ptr.hbm [resolvable:$true] %s403_s11 }
  0x15   :  { %157 = vmatpush.msra.mxu1 %v156_v3  ;;  %v154_v8 = vld [vmem:[#allocation7 + $0x68] sm:$0xff]  ;;  %v153_v9 = vld [vmem:[#allocation7 + $0x60] sm:$0xff]  ;;  %v152_v11 = vld [vmem:[#allocation7 + $0x58] sm:$0xff] }
  0x16   :  { %101 = vmatpush.msra.mxu0 %v80_v1  ;;  %v151_v13 = vld [vmem:[#allocation7 + $0x50] sm:$0xff]  ;;  %v150_v15 = vld [vmem:[#allocation7 + $0x48] sm:$0xff]  ;;  %v149_v17 = vld [vmem:[#allocation7 + $0x40] sm:$0xff] }
  0x17   :  { %415 = vmatmul.msk.f32.vlgmr.msra.gmra.mxu0 %vm82_vm0, %v79_v2  ;;  %158 = vmatpush.msra.mxu1 %v155_v6  ;;  %v148_v19 = vld [vmem:[#allocation7 + $0x38] sm:$0xff]  ;;  %v147_v21 = vld [vmem:[#allocation7 + $0x30] sm:$0xff]  ;;  %v146_v23 = vld [vmem:[#allocation7 + $0x28] sm:$0xff] }
  0x18   :  { %v145_v25 = vld [vmem:[#allocation7 + $0x20] sm:$0xff]  ;;  %v144_v27 = vld [vmem:[#allocation7 + $0x18] sm:$0xff]  ;;  %v143_v29 = vld [vmem:[#allocation7 + $0x10] sm:$0xff] }
  0x19   :  { %159 = vmatpush.msra.mxu1 %v154_v8  ;;  %v142_v31 = vld [vmem:[#allocation7 + $0x8] sm:$0xff]  ;;  %v141_v33 = vld [vmem:[#allocation7] sm:$0xff]  ;;  %v228_v51 = vld [vmem:[#allocation7 + $0xf8] sm:$0xff] }
  0x1a   :  { %v106_v42 = vld [vmem:[#allocation8] sm:$0x1]  ;;  %v423_v47 = vld [vmem:[#allocation8 + $0x1] ss:$0 sm:$0xff]  ;;  %229 = vmatpush.msra.mxu2 %v228_v51  ;;  %v227_v54 = vld [vmem:[#allocation7 + $0xf0] sm:$0xff] }
  0x1b   :  { %160 = vmatpush.msra.mxu1 %v153_v9  ;;  %v226_v56 = vld [vmem:[#allocation7 + $0xe8] sm:$0xff]  ;;  %v225_v58 = vld [vmem:[#allocation7 + $0xe0] sm:$0xff]  ;;  %v224_v60 = vld [vmem:[#allocation7 + $0xd8] sm:$0xff] }
  0x1c   :  { %230 = vmatpush.msra.mxu2 %v227_v54  ;;  %v223_v62 = vld [vmem:[#allocation7 + $0xd0] sm:$0xff]  ;;  %v222_v0 = vld [vmem:[#allocation7 + $0xc8] sm:$0xff]  ;;  %v221_v2 = vld [vmem:[#allocation7 + $0xc0] sm:$0xff] }
  0x1d   :  { %161 = vmatpush.msra.mxu1 %v152_v11  ;;  %v219_v6 = vld [vmem:[#allocation7 + $0xb0] sm:$0xff]  ;;  %v218_v8 = vld [vmem:[#allocation7 + $0xa8] sm:$0xff] }
  0x1e   :  { %231 = vmatpush.msra.mxu2 %v226_v56  ;;  %v291_v54 = vld [vmem:[#allocation7 + $0x130] sm:$0xff]  ;;  %v290_v56 = vld [vmem:[#allocation7 + $0x128] sm:$0xff] }
  0x1f   :  { %162 = vmatpush.msra.mxu1 %v151_v13 }
  0x20   :  { %232 = vmatpush.msra.mxu2 %v225_v58  ;;  %v289_v58 = vld [vmem:[#allocation7 + $0x120] sm:$0xff] }
  0x21   :  { %163 = vmatpush.msra.mxu1 %v150_v15  ;;  %v214_v15 = vld [vmem:[#allocation7 + $0x88] sm:$0xff] }
  0x22   :  { %233 = vmatpush.msra.mxu2 %v224_v60  ;;  %v288_v60 = vld [vmem:[#allocation7 + $0x118] sm:$0xff] }
  0x23   :  { %164 = vmatpush.msra.mxu1 %v149_v17  ;;  %v213_v17 = vld [vmem:[#allocation7 + $0x80] sm:$0xff] }
  0x24   :  { %234 = vmatpush.msra.mxu2 %v223_v62  ;;  %v287_v62 = vld [vmem:[#allocation7 + $0x110] sm:$0xff] }
  0x25   :  { %165 = vmatpush.msra.mxu1 %v148_v19 }
  0x26   :  { %235 = vmatpush.msra.mxu2 %v222_v0 }
  0x27   :  { %166 = vmatpush.msra.mxu1 %v147_v21 }
  0x28   :  { %236 = vmatpush.msra.mxu2 %v221_v2 }
  0x29   :  { %167 = vmatpush.msra.mxu1 %v146_v23 }
  0x2b   :  { %168 = vmatpush.msra.mxu1 %v145_v25 }
  0x2d   :  { %169 = vmatpush.msra.mxu1 %v144_v27 }
  0x2f   :  { %170 = vmatpush.msra.mxu1 %v143_v29 }
  0x31   :  { %171 = vmatpush.msra.mxu1 %v142_v31  ;;  %v424_v31 = vld [vmem:[#allocation8 + $0x3] ss:$0 sm:$0xff] }
  0x33   :  { %172 = vmatpush.msra.mxu1 %v141_v33 }
  0x94   :  { %v103_v4 = vpop.f32.mrf.mxu0 }
  0x95   :  { %v108_v5 = vrot.slane %v103_v4, 4 }
  0x97   :  { %v109_v7 = vadd.f32 %v108_v5, %v103_v4 }
  0x99   :  { %v110_v10 = vrot.slane %v109_v7, 2 }
  0x9b   :  { %v111_v12 = vadd.f32 %v110_v10, %v109_v7  ;;  %v217_v10 = vld [vmem:[#allocation7 + $0xa0] sm:$0xff] }
  0x9d   :  { %v112_v14 = vrot.slane %v111_v12, 1 }
  0x9f   :  { %v113_v16 = vadd.f32 %v112_v14, %v111_v12  ;;  %v216_v12 = vld [vmem:[#allocation7 + $0x98] sm:$0xff]  ;;  %v215_v14 = vld [vmem:[#allocation7 + $0x90] sm:$0xff] }
  0xa1   :  { %v114_v18 = vmul.f32 0.125, %v113_v16 }
  0xa3   :  { %v115_v20 = vsub.f32 %v103_v4, %v114_v18  ;;  %v220_v4 = vld [vmem:[#allocation7 + $0xb8] sm:$0xff] }
  0xa4   :  { %237 = vmatpush.msra.mxu2 %v220_v4 }
  0xa5   :  { %v116_v22 = vmul.f32 %v115_v20, %v115_v20 }
  0xa6   :  { %238 = vmatpush.msra.mxu2 %v219_v6 }
  0xa7   :  { %v117_v24 = vrot.slane %v116_v22, 4 }
  0xa8   :  { %239 = vmatpush.msra.mxu2 %v218_v8 }
  0xa9   :  { %v118_v26 = vadd.f32 %v117_v24, %v116_v22 }
  0xaa   :  { %240 = vmatpush.msra.mxu2 %v217_v10  ;;  %v249_v10 = vld [vmem:[#allocation8 + $0x4] sm:$0x1] }
  0xab   :  { %v119_v28 = vrot.slane %v118_v26, 2 }
  0xac   :  { %241 = vmatpush.msra.mxu2 %v216_v12 }
  0xad   :  { %v120_v30 = vadd.f32 %v119_v28, %v118_v26  ;;  %v177_v26 = vld [vmem:[#allocation8 + $0x2] sm:$0x1] }
  0xae   :  { %242 = vmatpush.msra.mxu2 %v215_v14 }
  0xaf   :  { %v121_v32 = vrot.slane %v120_v30, 1 }
  0xb0   :  { %243 = vmatpush.msra.mxu2 %v214_v15  ;;  %v425_v15 = vld [vmem:[#allocation8 + $0x5] ss:$0 sm:$0xff] }
  0xb1   :  { %v122_v34 = vadd.f32 %v121_v32, %v120_v30 }
  0xb2   :  { %244 = vmatpush.msra.mxu2 %v213_v17 }
  0xb3   :  { %v123_v35 = vmul.f32 0.125, %v122_v34 }
  0xb5   :  { %v124_v36 = vadd.f32 1e-05, %v123_v35  ;;  %v300_v35 = vld [vmem:[#allocation7 + $0x178] sm:$0xff] }
  0xb6   :  { %301 = vmatpush.msra.mxu3 %v300_v35 }
  0xb7   :  { %428 = vrsqrt.f32 %v124_v36  ;;  %vm131_vm2 = vweird.f32 %v124_v36 }
  0xbd   :  { %v429_v37 = vpop.eup %428 }
  0xbe   :  { %v126_v38 = vmul.f32 %v429_v37, %v124_v36  ;;  %vm132_vm1 = vweird.f32 %v429_v37 }
  0xbf   :  { %vm133_vm3 = vmor %vm131_vm2, %vm132_vm1 }
  0xc0   :  { %v127_v39 = vmul.f32 %v429_v37, %v126_v38  ;;  %v299_v38 = vld [vmem:[#allocation7 + $0x170] sm:$0xff] }
  0xc1   :  { %302 = vmatpush.msra.mxu3 %v299_v38  ;;  %v363_v38 = vld [vmem:[#allocation7 + $0x1b0] sm:$0xff] }
  0xc2   :  { %v128_v40 = vmul.f32 0.5, %v127_v39 }
  0xc4   :  { %v129_v41 = vsub.f32 1.5, %v128_v40  ;;  %v298_v40 = vld [vmem:[#allocation7 + $0x168] sm:$0xff] }
  0xc5   :  { %303 = vmatpush.msra.mxu3 %v298_v40  ;;  %v362_v40 = vld [vmem:[#allocation7 + $0x1a8] sm:$0xff] }
  0xc6   :  { %v130_v43 = vmul.f32 %v429_v37, %v129_v41 }
  0xc8   :  { %v134_v44 = vsel %vm133_vm3, %v429_v37, %v130_v43 }
  0xc9   :  { %v135_v45 = vmul.f32 %v134_v44, %v106_v42  ;;  %v297_v42 = vld [vmem:[#allocation7 + $0x160] sm:$0xff]  ;;  %v296_v44 = vld [vmem:[#allocation7 + $0x158] sm:$0xff] }
  0xca   :  { %304 = vmatpush.msra.mxu3 %v297_v42  ;;  %v361_v42 = vld [vmem:[#allocation7 + $0x1a0] sm:$0xff] }
  0xcb   :  { %v136_v46 = vperm.slane %v135_v45, 0 }
  0xcc   :  { %305 = vmatpush.msra.mxu3 %v296_v44  ;;  %v360_v44 = vld [vmem:[#allocation7 + $0x198] sm:$0xff] }
  0xcd   :  { %v137_v48 = vmul.f32 %v136_v46, %v115_v20  ;;  %v295_v46 = vld [vmem:[#allocation7 + $0x150] sm:$0xff] }
  0xce   :  { %306 = vmatpush.msra.mxu3 %v295_v46  ;;  %v359_v46 = vld [vmem:[#allocation7 + $0x190] sm:$0xff] }
  0xcf   :  { %v139_v49 = vadd.f32 %v423_v47, %v137_v48  ;;  %v294_v48 = vld [vmem:[#allocation7 + $0x148] sm:$0xff] }
  0xd0   :  { %307 = vmatpush.msra.mxu3 %v294_v48 }
  0xd1   :  { %v140_v50 = vmax.f32 %v139_v49, 0.0 }
  0xd3   :  { %173 = vmatmul.f32.vlgmr.msra.gmra.mxu1 %v140_v50  ;;  %v293_v50 = vld [vmem:[#allocation7 + $0x140] sm:$0xff] }
  0xd4   :  { %308 = vmatpush.msra.mxu3 %v293_v50 }
 0x150   :  { %v174_v52 = vpop.f32.mrf.mxu1 }
 0x151   :  { %v179_v53 = vrot.slane %v174_v52, 4 }
 0x153   :  { %v180_v55 = vadd.f32 %v179_v53, %v174_v52 }
 0x155   :  { %v181_v57 = vrot.slane %v180_v55, 2 }
 0x157   :  { %v182_v59 = vadd.f32 %v181_v57, %v180_v55 }
 0x159   :  { %v183_v61 = vrot.slane %v182_v59, 1 }
 0x15b   :  { %v184_v63 = vadd.f32 %v183_v61, %v182_v59 }
 0x15d   :  { %v185_v1 = vmul.f32 0.125, %v184_v63  ;;  %v286_v63 = vld [vmem:[#allocation7 + $0x108] sm:$0xff] }
 0x15f   :  { %v186_v3 = vsub.f32 %v174_v52, %v185_v1  ;;  %v292_v52 = vld [vmem:[#allocation7 + $0x138] sm:$0xff]  ;;  %v285_v1 = vld [vmem:[#allocation7 + $0x100] sm:$0xff] }
 0x160   :  { %309 = vmatpush.msra.mxu3 %v292_v52 }
 0x161   :  { %v187_v5 = vmul.f32 %v186_v3, %v186_v3 }
 0x162   :  { %310 = vmatpush.msra.mxu3 %v291_v54 }
 0x163   :  { %v188_v7 = vrot.slane %v187_v5, 4 }
 0x164   :  { %311 = vmatpush.msra.mxu3 %v290_v56 }
 0x165   :  { %v189_v9 = vadd.f32 %v188_v7, %v187_v5 }
 0x166   :  { %312 = vmatpush.msra.mxu3 %v289_v58  ;;  %v321_v58 = vld [vmem:[#allocation8 + $0x6] sm:$0x1] }
 0x167   :  { %v190_v11 = vrot.slane %v189_v9, 2 }
 0x168   :  { %313 = vmatpush.msra.mxu3 %v288_v60 }
 0x169   :  { %v191_v13 = vadd.f32 %v190_v11, %v189_v9 }
 0x16a   :  { %314 = vmatpush.msra.mxu3 %v287_v62 }
 0x16b   :  { %v192_v16 = vrot.slane %v191_v13, 1 }
 0x16c   :  { %315 = vmatpush.msra.mxu3 %v286_v63  ;;  %v426_v63 = vld [vmem:[#allocation8 + $0x7] ss:$0 sm:$0xff] }
 0x16d   :  { %v193_v18 = vadd.f32 %v192_v16, %v191_v13 }
 0x16e   :  { %316 = vmatpush.msra.mxu3 %v285_v1 }
 0x16f   :  { %v194_v19 = vmul.f32 0.125, %v193_v18 }
 0x171   :  { %v195_v20 = vadd.f32 1e-05, %v194_v19  ;;  %v372_v19 = vld [vmem:[#allocation7 + $0x1f8] sm:$0xff] }
 0x172   :  { %375 = vmatpush.msrb.mxu0 %v372_v19 }
 0x173   :  { %430 = vrsqrt.f32 %v195_v20  ;;  %vm202_vm5 = vweird.f32 %v195_v20 }
 0x179   :  { %v431_v21 = vpop.eup %430 }
 0x17a   :  { %v197_v22 = vmul.f32 %v431_v21, %v195_v20  ;;  %vm203_vm4 = vweird.f32 %v431_v21 }
 0x17b   :  { %vm204_vm6 = vmor %vm202_vm5, %vm203_vm4 }
 0x17c   :  { %v198_v23 = vmul.f32 %v431_v21, %v197_v22  ;;  %v371_v22 = vld [vmem:[#allocation7 + $0x1f0] sm:$0xff] }
 0x17d   :  { %376 = vmatpush.msrb.mxu0 %v371_v22 }
 0x17e   :  { %v199_v24 = vmul.f32 0.5, %v198_v23 }
 0x180   :  { %v200_v25 = vsub.f32 1.5, %v199_v24  ;;  %v370_v24 = vld [vmem:[#allocation7 + $0x1e8] sm:$0xff] }
 0x181   :  { %377 = vmatpush.msrb.mxu0 %v370_v24 }
 0x182   :  { %v201_v27 = vmul.f32 %v431_v21, %v200_v25 }
 0x184   :  { %v205_v28 = vsel %vm204_vm6, %v431_v21, %v201_v27 }
 0x185   :  { %v206_v29 = vmul.f32 %v205_v28, %v177_v26  ;;  %v369_v26 = vld [vmem:[#allocation7 + $0x1e0] sm:$0xff]  ;;  %v368_v28 = vld [vmem:[#allocation7 + $0x1d8] sm:$0xff] }
 0x186   :  { %378 = vmatpush.msrb.mxu0 %v369_v26 }
 0x187   :  { %v207_v30 = vperm.slane %v206_v29, 0 }
 0x188   :  { %379 = vmatpush.msrb.mxu0 %v368_v28 }
 0x189   :  { %v208_v32 = vmul.f32 %v207_v30, %v186_v3  ;;  %v367_v30 = vld [vmem:[#allocation7 + $0x1d0] sm:$0xff] }
 0x18a   :  { %380 = vmatpush.msrb.mxu0 %v367_v30 }
 0x18b   :  { %v210_v33 = vadd.f32 %v424_v31, %v208_v32  ;;  %v366_v32 = vld [vmem:[#allocation7 + $0x1c8] sm:$0xff] }
 0x18c   :  { %381 = vmatpush.msrb.mxu0 %v366_v32 }
 0x18d   :  { %v211_v34 = vmax.f32 %v210_v33, 0.0 }
 0x18f   :  { %245 = vmatmul.f32.vlgmr.msra.gmra.mxu2 %v211_v34  ;;  %v365_v34 = vld [vmem:[#allocation7 + $0x1c0] sm:$0xff] }
 0x190   :  { %382 = vmatpush.msrb.mxu0 %v365_v34 }
 0x212   :  { %v246_v36 = vpop.f32.mrf.mxu2 }
 0x213   :  { %v251_v37 = vrot.slane %v246_v36, 4 }
 0x215   :  { %v252_v39 = vadd.f32 %v251_v37, %v246_v36 }
 0x217   :  { %v253_v41 = vrot.slane %v252_v39, 2 }
 0x219   :  { %v254_v43 = vadd.f32 %v253_v41, %v252_v39 }
 0x21b   :  { %v255_v45 = vrot.slane %v254_v43, 1 }
 0x21d   :  { %v256_v47 = vadd.f32 %v255_v45, %v254_v43 }
 0x21f   :  { %v257_v49 = vmul.f32 0.125, %v256_v47  ;;  %v358_v47 = vld [vmem:[#allocation7 + $0x188] sm:$0xff] }
 0x221   :  { %v258_v51 = vsub.f32 %v246_v36, %v257_v49  ;;  %v364_v36 = vld [vmem:[#allocation7 + $0x1b8] sm:$0xff]  ;;  %v357_v49 = vld [vmem:[#allocation7 + $0x180] sm:$0xff] }
 0x222   :  { %383 = vmatpush.msrb.mxu0 %v364_v36 }
 0x223   :  { %v259_v53 = vmul.f32 %v258_v51, %v258_v51 }
 0x224   :  { %384 = vmatpush.msrb.mxu0 %v363_v38 }
 0x225   :  { %v260_v55 = vrot.slane %v259_v53, 4 }
 0x226   :  { %385 = vmatpush.msrb.mxu0 %v362_v40 }
 0x227   :  { %v261_v57 = vadd.f32 %v260_v55, %v259_v53 }
 0x228   :  { %386 = vmatpush.msrb.mxu0 %v361_v42 }
 0x229   :  { %v262_v59 = vrot.slane %v261_v57, 2 }
 0x22a   :  { %387 = vmatpush.msrb.mxu0 %v360_v44 }
 0x22b   :  { %v263_v61 = vadd.f32 %v262_v59, %v261_v57 }
 0x22c   :  { %388 = vmatpush.msrb.mxu0 %v359_v46 }
 0x22d   :  { %v264_v0 = vrot.slane %v263_v61, 1 }
 0x22e   :  { %389 = vmatpush.msrb.mxu0 %v358_v47 }
 0x22f   :  { %v265_v2 = vadd.f32 %v264_v0, %v263_v61 }
 0x230   :  { %390 = vmatpush.msrb.mxu0 %v357_v49 }
 0x231   :  { %v266_v3 = vmul.f32 0.125, %v265_v2 }
 0x233   :  { %v267_v4 = vadd.f32 1e-05, %v266_v3  ;;  %v427_v3 = vld [vmem:[#allocation8 + $0x8] ss:$0 sm:$0xff] }
 0x235   :  { %432 = vrsqrt.f32 %v267_v4  ;;  %vm274_vm8 = vweird.f32 %v267_v4 }
 0x23b   :  { %v433_v5 = vpop.eup %432 }
 0x23c   :  { %v269_v6 = vmul.f32 %v433_v5, %v267_v4  ;;  %vm275_vm7 = vweird.f32 %v433_v5 }
 0x23d   :  { %vm276_vm9 = vmor %vm274_vm8, %vm275_vm7 }
 0x23e   :  { %v270_v7 = vmul.f32 %v433_v5, %v269_v6 }
 0x240   :  { %v271_v8 = vmul.f32 0.5, %v270_v7 }
 0x242   :  { %v272_v9 = vsub.f32 1.5, %v271_v8 }
 0x244   :  { %v273_v11 = vmul.f32 %v433_v5, %v272_v9 }
 0x246   :  { %v277_v12 = vsel %vm276_vm9, %v433_v5, %v273_v11 }
 0x247   :  { %v278_v13 = vmul.f32 %v277_v12, %v249_v10 }
 0x249   :  { %v279_v14 = vperm.slane %v278_v13, 0 }
 0x24b   :  { %v280_v16 = vmul.f32 %v279_v14, %v258_v51 }
 0x24d   :  { %v282_v17 = vadd.f32 %v425_v15, %v280_v16 }
 0x24f   :  { %v283_v18 = vmax.f32 %v282_v17, 0.0 }
 0x251   :  { %317 = vmatmul.f32.vlgmr.msra.gmra.mxu3 %v283_v18 }
 0x2d4   :  { %v318_v20 = vpop.f32.mrf.mxu3 }
 0x2d5   :  { %v323_v21 = vrot.slane %v318_v20, 4 }
 0x2d7   :  { %v324_v23 = vadd.f32 %v323_v21, %v318_v20 }
 0x2d9   :  { %v325_v25 = vrot.slane %v324_v23, 2 }
 0x2db   :  { %v326_v27 = vadd.f32 %v325_v25, %v324_v23 }
 0x2dd   :  { %v327_v29 = vrot.slane %v326_v27, 1 }
 0x2df   :  { %v328_v31 = vadd.f32 %v327_v29, %v326_v27 }
 0x2e1   :  { %v329_v33 = vmul.f32 0.125, %v328_v31 }
 0x2e3   :  { %v330_v35 = vsub.f32 %v318_v20, %v329_v33 }
 0x2e5   :  { %v331_v37 = vmul.f32 %v330_v35, %v330_v35 }
 0x2e7   :  { %v332_v39 = vrot.slane %v331_v37, 4 }
 0x2e9   :  { %v333_v41 = vadd.f32 %v332_v39, %v331_v37 }
 0x2eb   :  { %v334_v43 = vrot.slane %v333_v41, 2 }
 0x2ed   :  { %v335_v45 = vadd.f32 %v334_v43, %v333_v41 }
 0x2ef   :  { %v336_v48 = vrot.slane %v335_v45, 1 }
 0x2f1   :  { %v337_v50 = vadd.f32 %v336_v48, %v335_v45 }
 0x2f3   :  { %v338_v51 = vmul.f32 0.125, %v337_v50 }
 0x2f5   :  { %v339_v52 = vadd.f32 1e-05, %v338_v51 }
 0x2f7   :  { %434 = vrsqrt.f32 %v339_v52  ;;  %vm346_vm11 = vweird.f32 %v339_v52 }
 0x2fd   :  { %v435_v53 = vpop.eup %434 }
 0x2fe   :  { %v341_v54 = vmul.f32 %v435_v53, %v339_v52  ;;  %vm347_vm10 = vweird.f32 %v435_v53 }
 0x2ff   :  { %vm348_vm12 = vmor %vm346_vm11, %vm347_vm10 }
 0x300   :  { %v342_v55 = vmul.f32 %v435_v53, %v341_v54 }
 0x302   :  { %v343_v56 = vmul.f32 0.5, %v342_v55 }
 0x304   :  { %v344_v57 = vsub.f32 1.5, %v343_v56 }
 0x306   :  { %v345_v59 = vmul.f32 %v435_v53, %v344_v57 }
 0x308   :  { %v349_v60 = vsel %vm348_vm12, %v435_v53, %v345_v59 }
 0x309   :  { %v350_v61 = vmul.f32 %v349_v60, %v321_v58 }
 0x30b   :  { %v351_v62 = vperm.slane %v350_v61, 0 }
 0x30d   :  { %v352_v0 = vmul.f32 %v351_v62, %v330_v35 }
 0x30f   :  { %v354_v1 = vadd.f32 %v426_v63, %v352_v0 }
 0x311   :  { %v355_v2 = vmax.f32 %v354_v1, 0.0 }
 0x313   :  { %391 = vmatmul.f32.vlgmr.msrb.gmra.mxu0 %v355_v2 }
 0x390   :  { %v392_v4 = vpop.f32.mrf.mxu0 }
 0x391   :  { %v393_v5 = vadd.f32 %v427_v3, %v392_v4 }
 0x393   :  { %395 = vst [vmem:[#allocation10] sm:$0xff] %v393_v5 }
 0x394   :  { %406 = dma.vmem_to_hbm [thread:$0]  %s402_s3, 128, %s404_s11, [#allocation4]  }
 0x395   :  { %562 = dma.done.wait [#allocation4], 128  }
 0x396   :  { %563 = vsyncadd [#allocation4], 4294967168 }
 0x397   :  { %411 = vsyncpa [#allocation3], 1 }
 0x398   :  { %412 = vsyncpa [#allocation6], 1 }
 0x399   :  { %413 = vsyncpa [#allocation9], 1 }
 0x39a   :  { %414 = vsyncpa [#allocation4], 1 }

</bundles_post_ra>
